<compile_context>
chip_gen: v7x
topology: tpu7x:2x2x1
jax: 0.10.0
libtpu: 0.0.40
codegen_flags: <defaults>
</compile_context>

<pallas_src>
import functools

import jax
import jax.numpy as jnp
from jax.experimental import pallas as pl
from jax.experimental.pallas import tpu as pltpu


def torsion_kernel(si_ref, s_ref,
                   w_in_ref, b_in_ref,
                   w_trunk_ref, b_trunk_ref,
                   w_head_ref, b_head_ref,
                   out_ref):
    c = w_in_ref.shape[0]
    s_dim = si_ref.shape[0]

    def mm(w, x):
        # MXU matmul with f32 accumulation (activations are (feat, tile)).
        return jnp.dot(w, x, preferred_element_type=jnp.float32)

    si = si_ref[...]                         # (s_dim, tile)
    sv = s_ref[...]                          # (c, tile)

    # fused first layer: relu(w1^T @ s_init^T + w2^T @ s^T + (b1+b2)^T)
    w1t = w_in_ref[:, :s_dim]                # (c, s_dim)
    w2t = w_in_ref[:, s_dim:]                # (c, c)
    a = jnp.maximum(mm(w1t, si) + mm(w2t, sv) + b_in_ref[...], 0.0)   # (c, tile)

    # trunk: two residual blocks, weights sliced from one (c, 4c) slab
    w3t = w_trunk_ref[:, 0 * c:1 * c]
    w4t = w_trunk_ref[:, 1 * c:2 * c]
    w5t = w_trunk_ref[:, 2 * c:3 * c]
    w6t = w_trunk_ref[:, 3 * c:4 * c]
    b3t = b_trunk_ref[:, 0:1]
    b4t = b_trunk_ref[:, 1:2]
    b5t = b_trunk_ref[:, 2:3]
    b6t = b_trunk_ref[:, 3:4]

    a = a + mm(w4t, jnp.maximum(mm(w3t, a) + b3t, 0.0)) + b4t
    a = a + mm(w6t, jnp.maximum(mm(w5t, a) + b5t, 0.0)) + b6t
    a_relu = jnp.maximum(a, 0.0)

    # fused heads: one (5, c) matmul -> rows [bond | angle(2) | torsion(2)]
    head = mm(w_head_ref[...], a_relu) + b_head_ref[...]              # (5, tile)
    bond = head[0:1, :]
    ang_u = head[1:3, :]
    tor_u = head[3:5, :]

    # norms via static sublane slices (no cross-lane reduce)
    ang_n = jnp.sqrt(head[1:2, :] * head[1:2, :] + head[2:3, :] * head[2:3, :])
    tor_n = jnp.sqrt(head[3:4, :] * head[3:4, :] + head[4:5, :] * head[4:5, :])
    ang = ang_u * pl.reciprocal(ang_n + 1e-8, approx=False)
    tor = tor_u * pl.reciprocal(tor_n + 1e-8, approx=False)

    # single packed, lane-dense store:
    # rows = [bond, angle0, angle1, angle_norm, torsion0, torsion1, torsion_norm, pad]
    pad = jnp.zeros_like(bond)
    out_ref[...] = jnp.concatenate([bond, ang, ang_n, tor, tor_n, pad], axis=0)


def prepare_params(params):
    """One-time fusion/transposition of the 9 Linear layers (not on the call path)."""
    (w1, b1, w2, b2, w3, b3, w4, b4, w5, b5, w6, b6,
     w71, b71, w72, b72, w73, b73) = params
    f = lambda a: a.astype(jnp.float32)
    w_in = jnp.concatenate([f(w1).T, f(w2).T], axis=1)                 # (c, s_dim + c)
    b_in = (f(b1) + f(b2)).T                                           # (c, 1)
    w_trunk = jnp.concatenate([f(w3).T, f(w4).T, f(w5).T, f(w6).T], axis=1)  # (c, 4c)
    b_trunk = jnp.concatenate([f(b3).T, f(b4).T, f(b5).T, f(b6).T], axis=1)  # (c, 4)
    w_head = jnp.concatenate([f(w71), f(w72), f(w73)], axis=1).T       # (5, c)
    b_head = jnp.concatenate([f(b71), f(b72), f(b73)], axis=1).T       # (5, 1)
    return (w_in, b_in, w_trunk, b_trunk, w_head, b_head)


@functools.partial(jax.jit, static_argnames=("row_tile",))
def torsion_net(s_init, s, prepped, row_tile=512):
    """s_init: (N, s_dim), s: (N, c). Returns the 5 outputs like the torch module."""
    N, s_dim = s_init.shape
    c = s.shape[1]
    w_in, b_in, w_trunk, b_trunk, w_head, b_head = prepped

    # ragged N: pad lane dim up to a multiple of row_tile, slice back afterwards
    grid_n = pl.cdiv(N, row_tile)
    n_pad = grid_n * row_tile

    siT = s_init.astype(jnp.float32).T                                  # (s_dim, N)
    sT = s.astype(jnp.float32).T                                        # (c, N)
    if n_pad != N:
        siT = jnp.pad(siT, ((0, 0), (0, n_pad - N)))
        sT = jnp.pad(sT, ((0, 0), (0, n_pad - N)))

    full = lambda a: pl.BlockSpec(a.shape, lambda i: (0, 0))
    in_specs = [
        pl.BlockSpec((s_dim, row_tile), lambda i: (0, i)),
        pl.BlockSpec((c, row_tile), lambda i: (0, i)),
        full(w_in), full(b_in),
        full(w_trunk), full(b_trunk),
        full(w_head), full(b_head),
    ]
    out_specs = pl.BlockSpec((8, row_tile), lambda i: (0, i))
    out_shape = jax.ShapeDtypeStruct((8, n_pad), jnp.float32)

    packed = pl.pallas_call(
        torsion_kernel,
        out_shape=out_shape,
        grid_spec=pltpu.PrefetchScalarGridSpec(
            num_scalar_prefetch=0,
            grid=(grid_n,),
            in_specs=in_specs,
            out_specs=out_specs,
        ),
        compiler_params=pltpu.CompilerParams(
            dimension_semantics=("parallel",)),
    )(siT, sT, w_in, b_in, w_trunk, b_trunk, w_head, b_head)

    packed = packed[:, :N]
    bond = packed[0:1, :].T
    angle = packed[1:3, :].T
    angle_norm = packed[3:4, :].T
    torsion = packed[4:6, :].T
    torsion_norm = packed[6:7, :].T
    return bond, angle, angle_norm, torsion, torsion_norm


def torsion_net_ref(s_init, s, params):
    """Pure-JAX reference mirroring the PyTorch forward."""
    (w1, b1, w2, b2, w3, b3, w4, b4, w5, b5, w6, b6,
     w71, b71, w72, b72, w73, b73) = params
    lin = lambda x, w, b: x @ w + b
    a = jax.nn.relu(lin(s_init, w1, b1) + lin(s, w2, b2))
    a = a + lin(jax.nn.relu(lin(a, w3, b3)), w4, b4)
    a = a + lin(jax.nn.relu(lin(a, w5, b5)), w6, b6)
    ar = jax.nn.relu(a)
    bond = lin(ar, w71, b71)
    ang_u = lin(ar, w72, b72)
    tor_u = lin(ar, w73, b73)
    ang_n = jnp.linalg.norm(ang_u, axis=-1, keepdims=True)
    tor_n = jnp.linalg.norm(tor_u, axis=-1, keepdims=True)
    return bond, ang_u / (ang_n + 1e-8), ang_n, tor_u / (tor_n + 1e-8), tor_n


def make_params(key, s_dim, c):
    """Deterministic synthetic weights; W stored (in, out), biases (1, out)."""
    shapes = [
        (s_dim, c), (1, c),   # linear1
        (c, c), (1, c),       # linear2
        (c, c), (1, c),       # linear3
        (c, c), (1, c),       # linear4
        (c, c), (1, c),       # linear5
        (c, c), (1, c),       # linear6
        (c, 1), (1, 1),       # linear7_1
        (c, 2), (1, 2),       # linear7_2
        (c, 2), (1, 2),       # linear7_3
    ]
    keys = jax.random.split(key, len(shapes))
    params = []
    for k, shp in zip(keys, shapes):
        fan_in = shp[0] if shp[0] > 1 else shapes[0][1]
        params.append(
            (jax.random.normal(k, shp, jnp.float32) * (1.0 / jnp.sqrt(fan_in)))
            .astype(jnp.float32))
    return tuple(params)


if __name__ == "__main__":
    # Small shapes. N=500 is deliberately NOT a multiple of row_tile so the
    # ragged pad/slice path is exercised; row_tile=256 keeps a 2-step
    # "parallel" grid so both v7x TensorCores get work at this tiny N.
    s_dim, c, N = 16, 32, 500
    key = jax.random.PRNGKey(0)
    k_si, k_s, k_p = jax.random.split(key, 3)

    s_init = jax.random.normal(k_si, (N, s_dim), jnp.float32)
    s = jax.random.normal(k_s, (N, c), jnp.float32)
    params = make_params(k_p, s_dim, c)
    prepped = prepare_params(params)

    outs = torsion_net(s_init, s, prepped, row_tile=256)
    outs = jax.block_until_ready(outs)

    refs = torsion_net_ref(s_init, s, params)
    for o, r in zip(outs, refs):
        assert o.shape == r.shape and o.dtype == r.dtype
        assert jnp.allclose(o, r, atol=1e-4, rtol=1e-4)

    print("KERNEL_OK")
</pallas_src>

<mosaic_0001>
module attributes {stable_mosaic.version = 11 : i64} {
  func.func @torsion_kernel(%arg0: i32, %arg1: memref<16x256xf32, #tpu.memory_space<vmem>>, %arg2: memref<32x256xf32, #tpu.memory_space<vmem>>, %arg3: memref<32x48xf32, #tpu.memory_space<vmem>>, %arg4: memref<32x1xf32, #tpu.memory_space<vmem>>, %arg5: memref<32x128xf32, #tpu.memory_space<vmem>>, %arg6: memref<32x4xf32, #tpu.memory_space<vmem>>, %arg7: memref<5x32xf32, #tpu.memory_space<vmem>>, %arg8: memref<5x1xf32, #tpu.memory_space<vmem>>, %arg9: memref<8x256xf32, #tpu.memory_space<vmem>>) attributes {dimension_semantics = [#tpu.dimension_semantics<parallel>], iteration_bounds = array<i64: 2>, scalar_prefetch = 0 : i64, scratch_operands = 0 : i64, tpu.core_type = #tpu.core_type<tc>, window_params = [{transform_indices = @transform_0, window_bounds = array<i64: 16, 256>}, {transform_indices = @transform_1, window_bounds = array<i64: 32, 256>}, {pipeline_mode = #tpu.pipeline_mode<synchronous>, transform_indices = @transform_2, window_bounds = array<i64: 32, 48>}, {pipeline_mode = #tpu.pipeline_mode<synchronous>, transform_indices = @transform_3, window_bounds = array<i64: 32, 1>}, {pipeline_mode = #tpu.pipeline_mode<synchronous>, transform_indices = @transform_4, window_bounds = array<i64: 32, 128>}, {pipeline_mode = #tpu.pipeline_mode<synchronous>, transform_indices = @transform_5, window_bounds = array<i64: 32, 4>}, {pipeline_mode = #tpu.pipeline_mode<synchronous>, transform_indices = @transform_6, window_bounds = array<i64: 5, 32>}, {pipeline_mode = #tpu.pipeline_mode<synchronous>, transform_indices = @transform_7, window_bounds = array<i64: 5, 1>}, {transform_indices = @transform_8, window_bounds = array<i64: 8, 256>}]} {
    %c0 = arith.constant 0 : index
    %c0_0 = arith.constant 0 : index
    %0 = vector.load %arg1[%c0, %c0_0] : memref<16x256xf32, #tpu.memory_space<vmem>>, vector<16x256xf32>
    %c0_1 = arith.constant 0 : index
    %c0_2 = arith.constant 0 : index
    %1 = vector.load %arg2[%c0_1, %c0_2] : memref<32x256xf32, #tpu.memory_space<vmem>>, vector<32x256xf32>
    %c0_3 = arith.constant 0 : index
    %c0_4 = arith.constant 0 : index
    %2 = vector.load %arg3[%c0_3, %c0_4] : memref<32x48xf32, #tpu.memory_space<vmem>>, vector<32x16xf32>
    %c0_5 = arith.constant 0 : index
    %c16 = arith.constant 16 : index
    %3 = vector.load %arg3[%c0_5, %c16] : memref<32x48xf32, #tpu.memory_space<vmem>>, vector<32x32xf32>
    %cst = arith.constant dense<0.000000e+00> : vector<32x256xf32>
    %4 = tpu.matmul %2, %0, %cst {dimension_numbers = #tpu.dot_dimension_numbers<[1], [0], [0], [1], [0, 0, 1, 1], [], []>} : vector<32x16xf32>, vector<16x256xf32>, vector<32x256xf32> -> vector<32x256xf32>
    %cst_6 = arith.constant dense<0.000000e+00> : vector<32x256xf32>
    %5 = tpu.matmul %3, %1, %cst_6 {dimension_numbers = #tpu.dot_dimension_numbers<[1], [0], [0], [1], [0, 0, 1, 1], [], []>} : vector<32x32xf32>, vector<32x256xf32>, vector<32x256xf32> -> vector<32x256xf32>
    %6 = arith.addf %4, %5 : vector<32x256xf32>
    %c0_7 = arith.constant 0 : index
    %c0_8 = arith.constant 0 : index
    %7 = vector.load %arg4[%c0_7, %c0_8] : memref<32x1xf32, #tpu.memory_space<vmem>>, vector<32x1xf32>
    %8 = vector.broadcast %7 : vector<32x1xf32> to vector<32x256xf32>
    %9 = arith.addf %6, %8 : vector<32x256xf32>
    %cst_9 = arith.constant 0.000000e+00 : f32
    %10 = vector.broadcast %cst_9 : f32 to vector<32x256xf32>
    %11 = arith.maximumf %9, %10 : vector<32x256xf32>
    %c0_10 = arith.constant 0 : index
    %c0_11 = arith.constant 0 : index
    %12 = vector.load %arg5[%c0_10, %c0_11] : memref<32x128xf32, #tpu.memory_space<vmem>>, vector<32x32xf32>
    %c0_12 = arith.constant 0 : index
    %c32 = arith.constant 32 : index
    %13 = vector.load %arg5[%c0_12, %c32] : memref<32x128xf32, #tpu.memory_space<vmem>>, vector<32x32xf32>
    %c0_13 = arith.constant 0 : index
    %c64 = arith.constant 64 : index
    %14 = vector.load %arg5[%c0_13, %c64] : memref<32x128xf32, #tpu.memory_space<vmem>>, vector<32x32xf32>
    %c0_14 = arith.constant 0 : index
    %c96 = arith.constant 96 : index
    %15 = vector.load %arg5[%c0_14, %c96] : memref<32x128xf32, #tpu.memory_space<vmem>>, vector<32x32xf32>
    %c0_15 = arith.constant 0 : index
    %c0_16 = arith.constant 0 : index
    %16 = vector.load %arg6[%c0_15, %c0_16] : memref<32x4xf32, #tpu.memory_space<vmem>>, vector<32x1xf32>
    %c0_17 = arith.constant 0 : index
    %c1 = arith.constant 1 : index
    %17 = vector.load %arg6[%c0_17, %c1] : memref<32x4xf32, #tpu.memory_space<vmem>>, vector<32x1xf32>
    %c0_18 = arith.constant 0 : index
    %c2 = arith.constant 2 : index
    %18 = vector.load %arg6[%c0_18, %c2] : memref<32x4xf32, #tpu.memory_space<vmem>>, vector<32x1xf32>
    %c0_19 = arith.constant 0 : index
    %c3 = arith.constant 3 : index
    %19 = vector.load %arg6[%c0_19, %c3] : memref<32x4xf32, #tpu.memory_space<vmem>>, vector<32x1xf32>
    %cst_20 = arith.constant dense<0.000000e+00> : vector<32x256xf32>
    %20 = tpu.matmul %12, %11, %cst_20 {dimension_numbers = #tpu.dot_dimension_numbers<[1], [0], [0], [1], [0, 0, 1, 1], [], []>} : vector<32x32xf32>, vector<32x256xf32>, vector<32x256xf32> -> vector<32x256xf32>
    %21 = vector.broadcast %16 : vector<32x1xf32> to vector<32x256xf32>
    %22 = arith.addf %20, %21 : vector<32x256xf32>
    %cst_21 = arith.constant 0.000000e+00 : f32
    %23 = vector.broadcast %cst_21 : f32 to vector<32x256xf32>
    %24 = arith.maximumf %22, %23 : vector<32x256xf32>
    %cst_22 = arith.constant dense<0.000000e+00> : vector<32x256xf32>
    %25 = tpu.matmul %13, %24, %cst_22 {dimension_numbers = #tpu.dot_dimension_numbers<[1], [0], [0], [1], [0, 0, 1, 1], [], []>} : vector<32x32xf32>, vector<32x256xf32>, vector<32x256xf32> -> vector<32x256xf32>
    %26 = arith.addf %11, %25 : vector<32x256xf32>
    %27 = vector.broadcast %17 : vector<32x1xf32> to vector<32x256xf32>
    %28 = arith.addf %26, %27 : vector<32x256xf32>
    %cst_23 = arith.constant dense<0.000000e+00> : vector<32x256xf32>
    %29 = tpu.matmul %14, %28, %cst_23 {dimension_numbers = #tpu.dot_dimension_numbers<[1], [0], [0], [1], [0, 0, 1, 1], [], []>} : vector<32x32xf32>, vector<32x256xf32>, vector<32x256xf32> -> vector<32x256xf32>
    %30 = vector.broadcast %18 : vector<32x1xf32> to vector<32x256xf32>
    %31 = arith.addf %29, %30 : vector<32x256xf32>
    %cst_24 = arith.constant 0.000000e+00 : f32
    %32 = vector.broadcast %cst_24 : f32 to vector<32x256xf32>
    %33 = arith.maximumf %31, %32 : vector<32x256xf32>
    %cst_25 = arith.constant dense<0.000000e+00> : vector<32x256xf32>
    %34 = tpu.matmul %15, %33, %cst_25 {dimension_numbers = #tpu.dot_dimension_numbers<[1], [0], [0], [1], [0, 0, 1, 1], [], []>} : vector<32x32xf32>, vector<32x256xf32>, vector<32x256xf32> -> vector<32x256xf32>
    %35 = arith.addf %28, %34 : vector<32x256xf32>
    %36 = vector.broadcast %19 : vector<32x1xf32> to vector<32x256xf32>
    %37 = arith.addf %35, %36 : vector<32x256xf32>
    %cst_26 = arith.constant 0.000000e+00 : f32
    %38 = vector.broadcast %cst_26 : f32 to vector<32x256xf32>
    %39 = arith.maximumf %37, %38 : vector<32x256xf32>
    %c0_27 = arith.constant 0 : index
    %c0_28 = arith.constant 0 : index
    %40 = vector.load %arg7[%c0_27, %c0_28] : memref<5x32xf32, #tpu.memory_space<vmem>>, vector<5x32xf32>
    %cst_29 = arith.constant dense<0.000000e+00> : vector<5x256xf32>
    %41 = tpu.matmul %40, %39, %cst_29 {dimension_numbers = #tpu.dot_dimension_numbers<[1], [0], [0], [1], [0, 0, 1, 1], [], []>} : vector<5x32xf32>, vector<32x256xf32>, vector<5x256xf32> -> vector<5x256xf32>
    %c0_30 = arith.constant 0 : index
    %c0_31 = arith.constant 0 : index
    %42 = vector.load %arg8[%c0_30, %c0_31] : memref<5x1xf32, #tpu.memory_space<vmem>>, vector<5x1xf32>
    %43 = vector.broadcast %42 : vector<5x1xf32> to vector<5x256xf32>
    %44 = arith.addf %41, %43 : vector<5x256xf32>
    %45 = vector.extract_strided_slice %44 {offsets = [0, 0], sizes = [1, 256], strides = [1, 1]} : vector<5x256xf32> to vector<1x256xf32>
    %46 = vector.extract_strided_slice %44 {offsets = [1, 0], sizes = [2, 256], strides = [1, 1]} : vector<5x256xf32> to vector<2x256xf32>
    %47 = vector.extract_strided_slice %44 {offsets = [3, 0], sizes = [2, 256], strides = [1, 1]} : vector<5x256xf32> to vector<2x256xf32>
    %48 = vector.extract_strided_slice %44 {offsets = [1, 0], sizes = [1, 256], strides = [1, 1]} : vector<5x256xf32> to vector<1x256xf32>
    %49 = vector.extract_strided_slice %44 {offsets = [1, 0], sizes = [1, 256], strides = [1, 1]} : vector<5x256xf32> to vector<1x256xf32>
    %50 = arith.mulf %48, %49 : vector<1x256xf32>
    %51 = vector.extract_strided_slice %44 {offsets = [2, 0], sizes = [1, 256], strides = [1, 1]} : vector<5x256xf32> to vector<1x256xf32>
    %52 = vector.extract_strided_slice %44 {offsets = [2, 0], sizes = [1, 256], strides = [1, 1]} : vector<5x256xf32> to vector<1x256xf32>
    %53 = arith.mulf %51, %52 : vector<1x256xf32>
    %54 = arith.addf %50, %53 : vector<1x256xf32>
    %55 = math.sqrt %54 : vector<1x256xf32>
    %56 = vector.extract_strided_slice %44 {offsets = [3, 0], sizes = [1, 256], strides = [1, 1]} : vector<5x256xf32> to vector<1x256xf32>
    %57 = vector.extract_strided_slice %44 {offsets = [3, 0], sizes = [1, 256], strides = [1, 1]} : vector<5x256xf32> to vector<1x256xf32>
    %58 = arith.mulf %56, %57 : vector<1x256xf32>
    %59 = vector.extract_strided_slice %44 {offsets = [4, 0], sizes = [1, 256], strides = [1, 1]} : vector<5x256xf32> to vector<1x256xf32>
    %60 = vector.extract_strided_slice %44 {offsets = [4, 0], sizes = [1, 256], strides = [1, 1]} : vector<5x256xf32> to vector<1x256xf32>
    %61 = arith.mulf %59, %60 : vector<1x256xf32>
    %62 = arith.addf %58, %61 : vector<1x256xf32>
    %63 = math.sqrt %62 : vector<1x256xf32>
    %cst_32 = arith.constant 9.99999993E-9 : f32
    %64 = vector.broadcast %cst_32 : f32 to vector<1x256xf32>
    %65 = arith.addf %55, %64 : vector<1x256xf32>
    %66 = tpu.reciprocal %65 : vector<1x256xf32> -> vector<1x256xf32>
    %67 = vector.broadcast %66 : vector<1x256xf32> to vector<2x256xf32>
    %68 = arith.mulf %46, %67 : vector<2x256xf32>
    %cst_33 = arith.constant 9.99999993E-9 : f32
    %69 = vector.broadcast %cst_33 : f32 to vector<1x256xf32>
    %70 = arith.addf %63, %69 : vector<1x256xf32>
    %71 = tpu.reciprocal %70 : vector<1x256xf32> -> vector<1x256xf32>
    %72 = vector.broadcast %71 : vector<1x256xf32> to vector<2x256xf32>
    %73 = arith.mulf %47, %72 : vector<2x256xf32>
    %cst_34 = arith.constant 0.000000e+00 : f32
    %74 = vector.broadcast %cst_34 : f32 to vector<1x256xf32>
    %75 = tpu.concatenate %45, %68, %55, %73, %63, %74 in 0 : vector<1x256xf32>, vector<2x256xf32>, vector<1x256xf32>, vector<2x256xf32>, vector<1x256xf32>, vector<1x256xf32> -> vector<8x256xf32>
    %c0_35 = arith.constant 0 : index
    %c0_36 = arith.constant 0 : index
    %76 = vector.load %arg9[%c0_35, %c0_36] : memref<8x256xf32, #tpu.memory_space<vmem>>, vector<8x256xf32>
    tpu.vector_store %arg9[%c0_35, %c0_36], %75 {strides = array<i32>} : memref<8x256xf32, #tpu.memory_space<vmem>>, vector<8x256xf32>,
    return
  }
  func.func @transform_0(%arg0: i32) -> (i32, i32) {
    %c0_i32 = arith.constant 0 : i32
    %c0_i32_0 = arith.constant 0 : i32
    return %c0_i32, %arg0 : i32, i32
  }
  func.func @transform_1(%arg0: i32) -> (i32, i32) {
    %c0_i32 = arith.constant 0 : i32
    %c0_i32_0 = arith.constant 0 : i32
    return %c0_i32, %arg0 : i32, i32
  }
  func.func @transform_2(%arg0: i32) -> (i32, i32) {
    %c0_i32 = arith.constant 0 : i32
    %c0_i32_0 = arith.constant 0 : i32
    %c0_i32_1 = arith.constant 0 : i32
    return %c0_i32, %c0_i32_0 : i32, i32
  }
  func.func @transform_3(%arg0: i32) -> (i32, i32) {
    %c0_i32 = arith.constant 0 : i32
    %c0_i32_0 = arith.constant 0 : i32
    %c0_i32_1 = arith.constant 0 : i32
    return %c0_i32, %c0_i32_0 : i32, i32
  }
  func.func @transform_4(%arg0: i32) -> (i32, i32) {
    %c0_i32 = arith.constant 0 : i32
    %c0_i32_0 = arith.constant 0 : i32
    %c0_i32_1 = arith.constant 0 : i32
    return %c0_i32, %c0_i32_0 : i32, i32
  }
  func.func @transform_5(%arg0: i32) -> (i32, i32) {
    %c0_i32 = arith.constant 0 : i32
    %c0_i32_0 = arith.constant 0 : i32
    %c0_i32_1 = arith.constant 0 : i32
    return %c0_i32, %c0_i32_0 : i32, i32
  }
  func.func @transform_6(%arg0: i32) -> (i32, i32) {
    %c0_i32 = arith.constant 0 : i32
    %c0_i32_0 = arith.constant 0 : i32
    %c0_i32_1 = arith.constant 0 : i32
    return %c0_i32, %c0_i32_0 : i32, i32
  }
  func.func @transform_7(%arg0: i32) -> (i32, i32) {
    %c0_i32 = arith.constant 0 : i32
    %c0_i32_0 = arith.constant 0 : i32
    %c0_i32_1 = arith.constant 0 : i32
    return %c0_i32, %c0_i32_0 : i32, i32
  }
  func.func @transform_8(%arg0: i32) -> (i32, i32) {
    %c0_i32 = arith.constant 0 : i32
    %c0_i32_0 = arith.constant 0 : i32
    return %c0_i32, %arg0 : i32, i32
  }
}

</mosaic_0001>

<bundles_post_ra>
// kernel: torsion_net.1
= control target key start
LH: loop header
LB: loop body
LE: loop exit
PB: predicated region body
PF: predicated region fallthrough
CT: control target
= control target key end

     0   :  { %s1675_s27 = smov 0   ;;  %s1677_s28 = smov 0   ;;  %s2003_s0 = inlined_call_operand.vmem [shape: f32[16,512], index: 0, kind: input, shape index: {}]   ;;  %s2004_s1 = inlined_call_operand.vmem [shape: f32[32,512], index: 1, kind: input, shape index: {}]   ;;  %s2005_s2 = inlined_call_operand.vmem [shape: f32[32,48], index: 2, kind: input, shape index: {}]   ;;  %s2006_s3 = inlined_call_operand.vmem [shape: f32[32,1], index: 3, kind: input, shape index: {}]   ;;  %s2007_s4 = inlined_call_operand.vmem [shape: f32[32,128], index: 4, kind: input, shape index: {}]   ;;  %s2008_s5 = inlined_call_operand.vmem [shape: f32[32,4], index: 5, kind: input, shape index: {}]   ;;  %s2009_s6 = inlined_call_operand.vmem [shape: f32[5,32], index: 6, kind: input, shape index: {}]   ;;  %s2010_s7 = inlined_call_operand.vmem [shape: f32[5,1], index: 7, kind: input, shape index: {}]   ;;  %s2011_s8 = inlined_call_operand.vmem [shape: f32[8,512], index: 8, kind: output, shape index: {}]  }
   0x1   :  { %s1679_s29 = smov 0  }
   0x2 LB: > { %s1443_s30 = sadd.s32 4294967295, %s1619_s29   ;;  %s1692_s9 = sadd.s32 1, %s1619_s29   ;;  %s1619_s29 = sphi %s1679_s29, %s2015_s29   ;;  %s1615_s28 = sphi %s1677_s28, %s2014_s28   ;;  %s1611_s27 = sphi %s1675_s27, %s2013_s27  }
   0x3   : > { %s22_s10 = ssub.s32 %s1619_s29, %s1692_s9  ;;  %s25_s11 = sadd.s32 1, %s1615_s28 }
   0x4   : > { %p23_p0 = scmp.eq.s32.totalorder %s22_s10, 0  ;;  %p32_p1 = scmp.ne.s32.totalorder %s1615_s28, %s1611_s27 }
   0x5   : > { %p33_p2 = scmp.eq.s32.totalorder %s1619_s29, 0  ;;  %p1446_p4 = scmp.ge.s32.totalorder %s1619_s29, 2 }
   0x6   : > { %s1701_s12 = scalar_select %p23_p0, %s1615_s28, %s25_s11  }
   0x7   : > { %p1703_p3 = por %p33_p2, %p32_p1  ;;  %254 = sbr.rel (%p1446_p4) target bundleno = 29 (0x1d), region = 40 }
   0xe   : > { %257 = sbr.rel (!%p1703_p3) target bundleno = 21 (0x15), region = 44  ;;  %s259_s14 = sand.u32 (%p1703_p3), 1, %s1615_s28  }
   0xf   : > { %s1485_s15 = sshll.u32 (%p1703_p3), %s1619_s29, 4  ;;  %s1447_s16 = sshll.u32 (%p1703_p3), %s259_s14, 5 }
  0x10   : > { %s264_s19 = scalar_lea.vmem (%p1703_p3), %s2003_s0, %s1485_s15  ;;  %s261_s20 = scalar_lea.vmem (%p1703_p3), [#allocation2], %s1447_s16 }
  0x11   : > { %v277_v0 = vld [vmem:[%s264_s19] sm:$0xff] (%p1703_p3)  ;;  %v279_v1 = vld [vmem:[%s264_s19 + $0x8] sm:$0xff] (%p1703_p3) }
  0x12   : > { %v281_v2 = vld [vmem:[%s264_s19 + $0x20] sm:$0xff] (%p1703_p3)  ;;  %278 = vst [vmem:[%s261_s20] sm:$0xff] (%p1703_p3), %v277_v0  ;;  %280 = vst [vmem:[%s261_s20 + $0x8] sm:$0xff] (%p1703_p3), %v279_v1  ;;  %v283_v3 = vld [vmem:[%s264_s19 + $0x28] sm:$0xff] (%p1703_p3) }
  0x13   : > { %282 = vst [vmem:[%s261_s20 + $0x10] sm:$0xff] (%p1703_p3), %v281_v2  ;;  %284 = vst [vmem:[%s261_s20 + $0x18] sm:$0xff] (%p1703_p3), %v283_v3 }
  0x15 PF: > { %290 = sbr.rel (!%p1703_p3) target bundleno = 29 (0x1d), region = 67  ;;  %s292_s21 = sand.u32 (%p1703_p3), 1, %s1615_s28  }
  0x16   : > { %s1486_s22 = sshll.u32 (%p1703_p3), %s1619_s29, 4  ;;  %s1450_s23 = sshll.u32 (%p1703_p3), %s292_s21, 6 }
  0x17   : > { %s297_s26 = scalar_lea.vmem (%p1703_p3), %s2004_s1, %s1486_s22  ;;  %s294_s10 = scalar_lea.vmem (%p1703_p3), [#allocation3], %s1450_s23 }
  0x18   : > { %v310_v4 = vld [vmem:[%s297_s26] sm:$0xff] (%p1703_p3)  ;;  %v312_v5 = vld [vmem:[%s297_s26 + $0x8] sm:$0xff] (%p1703_p3) }
  0x19   : > { %v314_v6 = vld [vmem:[%s297_s26 + $0x20] sm:$0xff] (%p1703_p3)  ;;  %311 = vst [vmem:[%s294_s10] sm:$0xff] (%p1703_p3), %v310_v4  ;;  %313 = vst [vmem:[%s294_s10 + $0x8] sm:$0xff] (%p1703_p3), %v312_v5  ;;  %v316_v7 = vld [vmem:[%s297_s26 + $0x28] sm:$0xff] (%p1703_p3) }
  0x1a   : > { %315 = vst [vmem:[%s294_s10 + $0x10] sm:$0xff] (%p1703_p3), %v314_v6  ;;  %v318_v8 = vld [vmem:[%s297_s26 + $0x40] sm:$0xff] (%p1703_p3)  ;;  %v320_v9 = vld [vmem:[%s297_s26 + $0x48] sm:$0xff] (%p1703_p3)  ;;  %317 = vst [vmem:[%s294_s10 + $0x18] sm:$0xff] (%p1703_p3), %v316_v7 }
  0x1b   : > { %319 = vst [vmem:[%s294_s10 + $0x20] sm:$0xff] (%p1703_p3), %v318_v8  ;;  %321 = vst [vmem:[%s294_s10 + $0x28] sm:$0xff] (%p1703_p3), %v320_v9  ;;  %v322_v10 = vld [vmem:[%s297_s26 + $0x60] sm:$0xff] (%p1703_p3)  ;;  %v324_v11 = vld [vmem:[%s297_s26 + $0x68] sm:$0xff] (%p1703_p3) }
  0x1c   : > { %323 = vst [vmem:[%s294_s10 + $0x30] sm:$0xff] %v322_v10  ;;  %325 = vst [vmem:[%s294_s10 + $0x38] sm:$0xff] %v324_v11 }
  0x1d PF: > { %p1453_p5 = scmp.ge.s32.totalorder %s1619_s29, 1  ;;  %p330_p6 = scmp.lt.s32.totalorder %s1619_s29, 3 }
  0x1f   : > { %p331_p7 = pnand %p1453_p5, %p330_p6 }
  0x20   : > { %v1727_v12 = vld [vmem:[%s2005_s2] sm:$0xff] (!%p331_p7)  ;;  %v1732_v13 = vld [vmem:[%s2005_s2 + $0x10] sm:$0xff] (!%p331_p7)  ;;  %s337_s16 = sand.u32 (!%p331_p7), 1, %s1611_s27   ;;  %s1621_s17 = smov (!%p331_p7), 112   ;;  %v1740_v14 = vld [vmem:[%s2005_s2 + $0x8] sm:$0xff] (!%p331_p7)  ;;  %v1622_v16 = vmov (!%p331_p7), 0.0  }
  0x21   : > { %334 = sbr.rel (%p331_p7) target bundleno = 1600 (0x640), region = 90  ;;  %409 = vrot.lane.b32.xlu0 (!%p331_p7), %v1727_v12, %s1621_s17  ;;  %413 = vrot.lane.b32.xlu1 (!%p331_p7), %v1732_v13, %s1621_s17  ;;  %s1455_s18 = sshll.u32 (!%p331_p7), %s337_s16, 6  ;;  %v1745_v15 = vld [vmem:[%s2005_s2 + $0x18] sm:$0xff] (!%p331_p7)  ;;  %v614_v32 = vld [vmem:[%s2006_s3 + $0x8] sm:$0xff] (!%p331_p7)  ;;  %v1623_v34 = vmov (!%p331_p7), 0   ;;  %vm417_vm0 = vcmask (!%p331_p7), 261120  }
  0x22   : > { %s1454_s19 = sshll.u32 (!%p331_p7), %s337_s16, 5  ;;  %490 = vmatprep.mubr.f32.mxu0 (!%p331_p7), %v1622_v16  ;;  %757 = vmatprep.mubr.f32.mxu1 (!%p331_p7), %v1622_v16  ;;  %s346_s27 = scalar_lea.vmem (!%p331_p7), [#allocation3], %s1455_s18  ;;  %v613_v33 = vld [vmem:[%s2006_s3] sm:$0xff] (!%p331_p7)  ;;  %v615_v35 = vld [vmem:[%s2006_s3 + $0x10] sm:$0xff] (!%p331_p7)  ;;  %v616_v36 = vld [vmem:[%s2006_s3 + $0x18] sm:$0xff] (!%p331_p7)  ;;  %vm515_vm1 = vcmask (!%p331_p7), 130048  }
  0x23   : > { %v394_v17 = vld [vmem:[%s346_s27 + $0x8] sm:$0xff] (!%p331_p7)  ;;  %v396_v18 = vld [vmem:[%s346_s27 + $0x18] sm:$0xff] (!%p331_p7)  ;;  %v393_v19 = vld [vmem:[%s346_s27] sm:$0xff] (!%p331_p7)  ;;  %s339_s24 = scalar_lea.vmem (!%p331_p7), [#allocation2], %s1454_s19  ;;  %1581 = vset.pattern.permute.xlu1 (!%p331_p7), %v1623_v34  ;;  %1580 = vset.pattern.permute.xlu0 (!%p331_p7), %v1623_v34  ;;  %s1624_s11 = smov (!%p331_p7), 96   ;;  %vm1346_vm6 = vcmask (!%p331_p7), 1040384  }
  0x24   : > { %v1487_v20 = vpack.c.bf16 (!%p331_p7), %v396_v18, %v394_v17  ;;  %v395_v21 = vld [vmem:[%s346_s27 + $0x10] sm:$0xff] (!%p331_p7)  ;;  %v398_v22 = vld [vmem:[%s346_s27 + $0x28] sm:$0xff] (!%p331_p7)  ;;  %v400_v23 = vld [vmem:[%s346_s27 + $0x38] sm:$0xff] (!%p331_p7)  ;;  %s1628_s18 = smov (!%p331_p7), 32   ;;  %s1456_s23 = sshll.u32 (!%p331_p7), %s1443_s30, 1  ;;  %vm1349_vm7 = vcmask (!%p331_p7), 1042432  }
  0x25   : > { %411 = vrot.lane.b32.xlu0 (!%p331_p7), %v1740_v14, %s1621_s17  ;;  %415 = vrot.lane.b32.xlu1 (!%p331_p7), %v1745_v15, %s1621_s17  ;;  %v1489_v24 = vpack.c.bf16 (!%p331_p7), %v395_v21, %v393_v19  ;;  %v1491_v25 = vpack.c.bf16 (!%p331_p7), %v400_v23, %v398_v22  ;;  %v397_v26 = vld [vmem:[%s346_s27 + $0x20] sm:$0xff] (!%p331_p7)  ;;  %v399_v27 = vld [vmem:[%s346_s27 + $0x30] sm:$0xff] (!%p331_p7)  ;;  %v1625_v21 = vmov (!%p331_p7), 1   ;;  %s1626_s17 = smov (!%p331_p7), 64   ;;  %p384_p8 = scmp.lt.s32.totalorder (!%p331_p7), %s1456_s23, 3  ;;  %vm1352_vm8 = vcmask (!%p331_p7), 1043456  }
  0x26   : > { %1488 = vmatprep.subr.bf16.mxu0 (!%p331_p7), %v1487_v20  ;;  %v390_v28 = vld [vmem:[%s339_s24 + $0x8] sm:$0xff] (!%p331_p7)  ;;  %v392_v29 = vld [vmem:[%s339_s24 + $0x18] sm:$0xff] (!%p331_p7)  ;;  %v1493_v30 = vpack.c.bf16 (!%p331_p7), %v399_v27, %v397_v26  ;;  %v1768_v37 = vld [vmem:[%s2008_s5] sm:$0xff] (!%p331_p7)  ;;  %vm1355_vm9 = vcmask (!%p331_p7), 1045504   ;;  %vm1358_vm10 = vcmask (!%p331_p7), 1046528  }
  0x27   : > { %1490 = vmatpush1.bf16.msra.mxu0 (!%p331_p7), %v1489_v24  ;;  %v1495_v31 = vpack.c.bf16 (!%p331_p7), %v392_v29, %v390_v28  ;;  %v1773_v38 = vld [vmem:[%s2008_s5 + $0x8] sm:$0xff] (!%p331_p7)  ;;  %v1780_v39 = vld [vmem:[%s2008_s5 + $0x10] sm:$0xff] (!%p331_p7)  ;;  %v1785_v40 = vld [vmem:[%s2008_s5 + $0x18] sm:$0xff] (!%p331_p7) }
  0x28   : > { %1492 = vmatprep.subr.bf16.mxu0 %v1491_v25  ;;  %v389_v41 = vld [vmem:[%s339_s24] sm:$0xff]  ;;  %v391_v42 = vld [vmem:[%s339_s24 + $0x10] sm:$0xff]  ;;  %v1813_v49 = vld [vmem:[%s2007_s4 + $0x8] sm:$0xff]  ;;  %s2017_s23 = smov (!%p384_p8, %s1456_s23), 3 }
  0x29   : > { %624 = vperm.xlu1 %1581, %v614_v32   ;;  %619 = vperm.xlu0 %1580, %v613_v33   ;;  %v1497_v43 = vpack.c.bf16 %v391_v42, %v389_v41  ;;  %v1808_v48 = vld [vmem:[%s2007_s4] sm:$0xff]  ;;  %v1820_v50 = vld [vmem:[%s2007_s4 + $0x10] sm:$0xff]  ;;  %v1825_v51 = vld [vmem:[%s2007_s4 + $0x18] sm:$0xff]  ;;  %s1457_s27 = sshll.u32 %s2017_s23, 3 }
  0x2a   : > { %s387_s24 = scalar_lea.vmem %s2011_s8, %s1457_s27 }
  0x2b   : > { %1494 = vmatpush1.bf16.msra.mxu0 %v1493_v30 }
  0x2c   : > { %1496 = vmatprep.subr.bf16.mxu0 %v1495_v31 }
  0x2d   : > { %629 = vperm.xlu1 %1581, %v615_v35   ;;  %634 = vperm.xlu0 %1580, %v616_v36  }
  0x31   : > { %663 = vperm.xlu1 %1581, %v1768_v37   ;;  %668 = vperm.xlu0 %1580, %v1773_v38  }
  0x35   : > { %673 = vperm.xlu1 %1581, %v1780_v39   ;;  %678 = vperm.xlu0 %1580, %v1785_v40  }
  0x39   : > { %790 = vrot.lane.b32.xlu1 %v1808_v48, %s1624_s11  ;;  %792 = vrot.lane.b32.xlu0 %v1813_v49, %s1624_s11 }
  0x3a   : > { %1582 = vset.pattern.permute.xlu1 %v1625_v21  ;;  %1583 = vset.pattern.permute.xlu0 %v1625_v21 }
  0x3d   : > { %794 = vrot.lane.b32.xlu1 %v1820_v50, %s1624_s11  ;;  %796 = vrot.lane.b32.xlu0 %v1825_v51, %s1624_s11 }
  0x41   : > { %904 = vperm.xlu1 %1582, %v1768_v37   ;;  %908 = vperm.xlu0 %1583, %v1773_v38  }
  0x45   : > { %912 = vperm.xlu1 %1582, %v1780_v39   ;;  %943 = vrot.lane.b32.xlu0 %v1808_v48, %s1626_s17 }
  0x49   : > { %916 = vperm.xlu1 %1582, %v1785_v40   ;;  %947 = vrot.lane.b32.xlu0 %v1820_v50, %s1626_s17 }
  0x4d   : > { %945 = vrot.lane.b32.xlu1 %v1813_v49, %s1626_s17 }
  0x51   : > { %949 = vrot.lane.b32.xlu1 %v1825_v51, %s1626_s17 }
  0x93   : > { %v410_v44 = vpop.permute.xlu0 %409  ;;  %v414_v46 = vpop.permute.xlu1 %413 }
  0x94   : > { %1458 = vmatmul.mubr.msk.f32.vlgmr.msra.gmra.mrb[0].mxu0 %vm417_vm0, %v410_v44 }
  0x95   : > { %496 = vmatprep.mubr.f32.mxu0 %v1622_v16  ;;  %1498 = vmatpush1.bf16.msra.mxu0 %v1497_v43 }
  0x97   : > { %v412_v45 = vpop.permute.xlu0 %411  ;;  %v416_v47 = vpop.permute.xlu1 %415 }
  0x98   : > { %1459 = vmatmul.mubr.msk.f32.gmra.mrb[2].mxu0 %vm417_vm0, %v412_v45 }
  0x99   : > { %502 = vmatprep.mubr.f32.mxu0 %v1622_v16 }
  0x9c   : > { %1460 = vmatmul.mubr.msk.f32.gmra.mrb[4].mxu0 %vm417_vm0, %v414_v46 }
  0x9d   : > { %508 = vmatprep.mubr.f32.mxu0 %v1622_v16 }
  0xa0   : > { %1461 = vmatmul.mubr.msk.f32.gmra.mrb[6].mxu0 %vm417_vm0, %v416_v47 }
  0xa1   : > { %588 = vmatprep.mubr.f32.mxu0 %v1622_v16 }
  0xa4   : > { %1462 = vmatmul.mubr.msk.f32.vlgmr.msra.gmra.mrb[0].mxu0 %vm515_vm1, %v1727_v12 }
  0xa5   : > { %594 = vmatprep.mubr.f32.mxu0 %v1622_v16 }
  0xa8   : > { %1463 = vmatmul.mubr.msk.f32.gmra.mrb[2].mxu0 %vm515_vm1, %v1740_v14  ;;  %v620_v54 = vpop.permute.xlu0 %619  ;;  %v625_v55 = vpop.permute.xlu1 %624 }
  0xa9   : > { %600 = vmatprep.mubr.f32.mxu0 %v1622_v16 }
  0xac   : > { %1464 = vmatmul.mubr.msk.f32.gmra.mrb[4].mxu0 %vm515_vm1, %v1732_v13  ;;  %v630_v5 = vpop.permute.xlu1 %629  ;;  %v635_v7 = vpop.permute.xlu0 %634 }
  0xad   : > { %606 = vmatprep.mubr.f32.mxu0 %v1622_v16 }
  0xb0   : > { %1465 = vmatmul.mubr.msk.f32.gmra.mrb[6].mxu0 %vm515_vm1, %v1745_v15  ;;  %v664_v24 = vpop.permute.xlu1 %663  ;;  %v669_v26 = vpop.permute.xlu0 %668 }
  0xb1   : > { %1023 = vmatprep.mubr.f32.mxu0 %v1622_v16 }
  0xb4   : > { %v674_v44 = vpop.permute.xlu1 %673  ;;  %v679_v47 = vpop.permute.xlu0 %678 }
 0x177   : > { %v590_v52 = vpop.f32.mrb[0].mxu0 }
 0x178   : > { %v592_v53 = vpop.f32.mrb[1].mxu0  ;;  %v1831_v58 = vadd.f32 %v620_v54, %v590_v52 }
 0x179   : > { %v1829_v56 = vadd.f32 %v620_v54, %v592_v53 }
 0x17a   : > { %v645_v2 = vmax.f32 %v1831_v58, 0.0 }
 0x17b   : > { %v596_v57 = vpop.f32.mrb[2].mxu0  ;;  %v646_v63 = vmax.f32 %v1829_v56, 0.0 }
 0x17c   : > { %v1833_v59 = vadd.f32 %v625_v55, %v596_v57  ;;  %v598_v60 = vpop.f32.mrb[3].mxu0 }
 0x17d   : > { %v1835_v61 = vadd.f32 %v625_v55, %v598_v60 }
 0x17e   : > { %v647_v62 = vmax.f32 %v1833_v59, 0.0 }
 0x17f   : > { %v648_v0 = vmax.f32 %v1835_v61, 0.0  ;;  %v602_v1 = vpop.f32.mrb[4].mxu0 }
 0x180   : > { %v604_v3 = vpop.f32.mrb[5].mxu0  ;;  %v1501_v6 = vpack.c.bf16 %v647_v62, %v645_v2  ;;  %v1851_v10 = vadd.f32 %v630_v5, %v602_v1 }
 0x181   : > { %v1499_v4 = vpack.c.bf16 %v648_v0, %v646_v63  ;;  %v1849_v8 = vadd.f32 %v630_v5, %v604_v3 }
 0x182   : > { %v649_v18 = vmax.f32 %v1851_v10, 0.0 }
 0x183   : > { %v608_v9 = vpop.f32.mrb[6].mxu0  ;;  %1500 = vmatprep.subr.bf16.mxu1 %v1499_v4  ;;  %v650_v15 = vmax.f32 %v1849_v8, 0.0 }
 0x184   : > { %v1853_v11 = vadd.f32 %v635_v7, %v608_v9  ;;  %v610_v12 = vpop.f32.mrb[7].mxu0  ;;  %1502 = vmatpush1.bf16.msra.mxu1 %v1501_v6  ;;  %v793_v9 = vpop.permute.xlu0 %792 }
 0x185   : > { %v1855_v13 = vadd.f32 %v635_v7, %v610_v12  ;;  %v791_v7 = vpop.permute.xlu1 %790 }
 0x186   : > { %v651_v14 = vmax.f32 %v1853_v11, 0.0 }
 0x187   : > { %v652_v17 = vmax.f32 %v1855_v13, 0.0 }
 0x188   : > { %v1505_v20 = vpack.c.bf16 %v651_v14, %v649_v18 }
 0x189   : > { %v1503_v19 = vpack.c.bf16 %v652_v17, %v650_v15  ;;  %v795_v12 = vpop.permute.xlu1 %794 }
 0x18b   : > { %1504 = vmatprep.subr.bf16.mxu1 %v1503_v19  ;;  %v797_v19 = vpop.permute.xlu0 %796 }
 0x18c   : > { %1506 = vmatpush1.bf16.msra.mxu1 %v1505_v20  ;;  %v1627_v20 = vmov 2  }
 0x18d   : > { %1584 = vset.pattern.permute.xlu0 %v1627_v20  ;;  %1585 = vset.pattern.permute.xlu1 %v1627_v20 }
 0x18e   : > { %928 = vperm.xlu0 %1584, %v1768_v37   ;;  %932 = vperm.xlu1 %1585, %v1773_v38  }
 0x18f   : > { %1466 = vmatmul.mubr.msk.f32.vlgmr.msra.gmra.mrb[0].mxu1 %vm417_vm0, %v1808_v48 }
 0x190   : > { %763 = vmatprep.mubr.f32.mxu1 %v1622_v16 }
 0x192   : > { %936 = vperm.xlu1 %1585, %v1780_v39   ;;  %940 = vperm.xlu0 %1584, %v1785_v40  }
 0x193   : > { %1467 = vmatmul.mubr.msk.f32.gmra.mrb[2].mxu1 %vm417_vm0, %v1813_v49 }
 0x194   : > { %769 = vmatprep.mubr.f32.mxu1 %v1622_v16 }
 0x196   : > { %1056 = vrot.lane.b32.xlu1 %v1808_v48, %s1628_s18  ;;  %1058 = vrot.lane.b32.xlu0 %v1813_v49, %s1628_s18 }
 0x197   : > { %1468 = vmatmul.mubr.msk.f32.gmra.mrb[4].mxu1 %vm417_vm0, %v1820_v50 }
 0x198   : > { %775 = vmatprep.mubr.f32.mxu1 %v1622_v16 }
 0x19a   : > { %1060 = vrot.lane.b32.xlu1 %v1820_v50, %s1628_s18  ;;  %1062 = vrot.lane.b32.xlu0 %v1825_v51, %s1628_s18 }
 0x19b   : > { %1469 = vmatmul.mubr.msk.f32.gmra.mrb[6].mxu1 %vm417_vm0, %v1825_v51 }
 0x19c   : > { %870 = vmatprep.mubr.f32.mxu1 %v1622_v16 }
 0x262   : > { %v759_v22 = vpop.f32.mrb[0].mxu1 }
 0x263   : > { %v761_v23 = vpop.f32.mrb[1].mxu1  ;;  %v760_v25 = vadd.f32 %v759_v22, %v664_v24 }
 0x264   : > { %v762_v27 = vadd.f32 %v761_v23, %v664_v24  ;;  %v905_v23 = vpop.permute.xlu1 %904 }
 0x265   : > { %v782_v32 = vmax.f32 %v760_v25, 0.0 }
 0x266   : > { %v765_v28 = vpop.f32.mrb[2].mxu1  ;;  %v783_v35 = vmax.f32 %v762_v27, 0.0 }
 0x267   : > { %v766_v29 = vadd.f32 %v765_v28, %v669_v26  ;;  %v767_v30 = vpop.f32.mrb[3].mxu1 }
 0x268   : > { %v768_v31 = vadd.f32 %v767_v30, %v669_v26  ;;  %v909_v26 = vpop.permute.xlu0 %908 }
 0x269   : > { %v784_v33 = vmax.f32 %v766_v29, 0.0  ;;  %v913_v29 = vpop.permute.xlu1 %912 }
 0x26a   : > { %v785_v36 = vmax.f32 %v768_v31, 0.0  ;;  %v771_v41 = vpop.f32.mrb[4].mxu1 }
 0x26b   : > { %v1509_v42 = vpack.c.bf16 %v784_v33, %v782_v32  ;;  %v773_v43 = vpop.f32.mrb[5].mxu1  ;;  %v772_v46 = vadd.f32 %v771_v41, %v674_v44 }
 0x26c   : > { %v1507_v45 = vpack.c.bf16 %v785_v36, %v783_v35  ;;  %v774_v52 = vadd.f32 %v773_v43, %v674_v44 }
 0x26d   : > { %v786_v60 = vmax.f32 %v772_v46, 0.0  ;;  %v917_v33 = vpop.permute.xlu1 %916 }
 0x26e   : > { %v777_v53 = vpop.f32.mrb[6].mxu1  ;;  %1508 = vmatprep.subr.bf16.mxu1 %v1507_v45  ;;  %v787_v3 = vmax.f32 %v774_v52, 0.0 }
 0x26f   : > { %v778_v54 = vadd.f32 %v777_v53, %v679_v47  ;;  %v779_v55 = vpop.f32.mrb[7].mxu1  ;;  %1510 = vmatpush1.bf16.msra.mxu1 %v1509_v42  ;;  %v1629_v42 = vmov 3  }
 0x270   : > { %v780_v57 = vadd.f32 %v779_v55, %v679_v47  ;;  %1586 = vset.pattern.permute.xlu1 %v1629_v42  ;;  %1587 = vset.pattern.permute.xlu0 %v1629_v42 }
 0x271   : > { %v788_v1 = vmax.f32 %v778_v54, 0.0  ;;  %v946_v13 = vpop.permute.xlu1 %945  ;;  %1170 = vperm.xlu1 %1586, %v1768_v37   ;;  %1174 = vperm.xlu0 %1587, %v1773_v38  }
 0x272   : > { %v789_v4 = vmax.f32 %v780_v57, 0.0 }
 0x273   : > { %v1513_v5 = vpack.c.bf16 %v788_v1, %v786_v60 }
 0x274   : > { %v1511_v6 = vpack.c.bf16 %v789_v4, %v787_v3 }
 0x275   : > { %1178 = vperm.xlu1 %1586, %v1780_v39   ;;  %1588 = vset.pattern.permute.xlu0 %v1623_v34 }
 0x276   : > { %1512 = vmatprep.subr.bf16.mxu1 %v1511_v6 }
 0x277   : > { %1514 = vmatpush1.bf16.msra.mxu1 %v1513_v5 }
 0x279   : > { %1182 = vperm.xlu1 %1586, %v1785_v40  }
 0x27a   : > { %1470 = vmatmul.mubr.msk.f32.vlgmr.msra.gmra.mrb[8].mxu1 %vm417_vm0, %v791_v7 }
 0x27b   : > { %876 = vmatprep.mubr.f32.mxu1 %v1622_v16 }
 0x27e   : > { %1471 = vmatmul.mubr.msk.f32.gmra.mrb[10].mxu1 %vm417_vm0, %v793_v9 }
 0x27f   : > { %882 = vmatprep.mubr.f32.mxu1 %v1622_v16 }
 0x282   : > { %1472 = vmatmul.mubr.msk.f32.gmra.mrb[12].mxu1 %vm417_vm0, %v795_v12 }
 0x283   : > { %888 = vmatprep.mubr.f32.mxu1 %v1622_v16 }
 0x286   : > { %1473 = vmatmul.mubr.msk.f32.gmra.mrb[14].mxu1 %vm417_vm0, %v797_v19 }
 0x287   : > { %1136 = vmatprep.mubr.f32.mxu1 %v1622_v16 }
 0x34d   : > { %v872_v21 = vpop.f32.mrb[8].mxu1 }
 0x34e   : > { %v874_v22 = vpop.f32.mrb[9].mxu1  ;;  %v895_v27 = vadd.f32 %v872_v21, %v645_v2 }
 0x34f   : > { %v896_v24 = vadd.f32 %v874_v22, %v646_v63 }
 0x350   : > { %v1919_v63 = vadd.f32 %v905_v23, %v895_v27 }
 0x351   : > { %v878_v25 = vpop.f32.mrb[10].mxu1  ;;  %v1915_v51 = vadd.f32 %v905_v23, %v896_v24 }
 0x352   : > { %v897_v48 = vadd.f32 %v878_v25, %v647_v62  ;;  %v880_v28 = vpop.f32.mrb[11].mxu1 }
 0x353   : > { %v898_v49 = vadd.f32 %v880_v28, %v648_v0 }
 0x354   : > { %v1913_v50 = vadd.f32 %v909_v26, %v897_v48 }
 0x355   : > { %v1917_v30 = vadd.f32 %v909_v26, %v898_v49  ;;  %v884_v56 = vpop.f32.mrb[12].mxu1 }
 0x356   : > { %v886_v31 = vpop.f32.mrb[13].mxu1  ;;  %v1517_v59 = vpack.c.bf16 %v1913_v50, %v1919_v63  ;;  %v899_v0 = vadd.f32 %v884_v56, %v649_v18  ;;  %v950_v18 = vpop.permute.xlu1 %949 }
 0x357   : > { %v1515_v58 = vpack.c.bf16 %v1917_v30, %v1915_v51  ;;  %v900_v61 = vadd.f32 %v886_v31, %v650_v15 }
 0x358   : > { %v1939_v15 = vadd.f32 %v913_v29, %v899_v0 }
 0x359   : > { %v890_v62 = vpop.f32.mrb[14].mxu1  ;;  %1516 = vmatprep.subr.bf16.mxu0 %v1515_v58  ;;  %v1935_v41 = vadd.f32 %v913_v29, %v900_v61  ;;  %v1202_v29 = vld [vmem:[%s2010_s7] sm:$0x1f] }
 0x35a   : > { %v901_v2 = vadd.f32 %v890_v62, %v651_v14  ;;  %v892_v32 = vpop.f32.mrb[15].mxu1  ;;  %1518 = vmatpush1.bf16.msra.mxu0 %v1517_v59  ;;  %v944_v14 = vpop.permute.xlu0 %943  ;;  %1205 = vperm.xlu0 %1588, %v1202_v29   ;;  %v1310_v29 = vlaneseq }
 0x35b   : > { %v902_v35 = vadd.f32 %v892_v32, %v652_v17  ;;  %v933_v46 = vpop.permute.xlu1 %932 }
 0x35c   : > { %v1933_v36 = vadd.f32 %v917_v33, %v901_v2 }
 0x35d   : > { %v1937_v8 = vadd.f32 %v917_v33, %v902_v35 }
 0x35e   : > { %v1521_v11 = vpack.c.bf16 %v1933_v36, %v1939_v15  ;;  %v948_v17 = vpop.permute.xlu0 %947 }
 0x35f   : > { %v1519_v10 = vpack.c.bf16 %v1937_v8, %v1935_v41  ;;  %v937_v38 = vpop.permute.xlu1 %936 }
 0x361   : > { %1520 = vmatprep.subr.bf16.mxu0 %v1519_v10 }
 0x362   : > { %1522 = vmatpush1.bf16.msra.mxu0 %v1521_v11  ;;  %v929_v43 = vpop.permute.xlu0 %928 }
 0x363   : > { %v1057_v27 = vpop.permute.xlu1 %1056 }
 0x365   : > { %1474 = vmatmul.mubr.msk.f32.vlgmr.msra.gmra.mrb[8].mxu0 %vm417_vm0, %v944_v14 }
 0x366   : > { %1029 = vmatprep.mubr.f32.mxu0 %v1622_v16  ;;  %v941_v6 = vpop.permute.xlu0 %940 }
 0x367   : > { %v1061_v28 = vpop.permute.xlu1 %1060 }
 0x369   : > { %1475 = vmatmul.mubr.msk.f32.gmra.mrb[10].mxu0 %vm417_vm0, %v946_v13 }
 0x36a   : > { %1035 = vmatprep.mubr.f32.mxu0 %v1622_v16  ;;  %v1059_v48 = vpop.permute.xlu0 %1058 }
 0x36b   : > { %v1171_v59 = vpop.permute.xlu1 %1170 }
 0x36d   : > { %1476 = vmatmul.mubr.msk.f32.gmra.mrb[12].mxu0 %vm417_vm0, %v948_v17 }
 0x36e   : > { %1041 = vmatprep.mubr.f32.mxu0 %v1622_v16  ;;  %v1063_v49 = vpop.permute.xlu0 %1062 }
 0x36f   : > { %v1179_v11 = vpop.permute.xlu1 %1178 }
 0x371   : > { %1477 = vmatmul.mubr.msk.f32.gmra.mrb[14].mxu0 %vm417_vm0, %v950_v18 }
 0x372   : > { %1275 = vmatprep.mubr.f32.mxu0 %v1622_v16  ;;  %v1175_v0 = vpop.permute.xlu0 %1174 }
 0x438   : > { %v1025_v44 = vpop.f32.mrb[8].mxu0 }
 0x439   : > { %v1027_v45 = vpop.f32.mrb[9].mxu0  ;;  %v1026_v47 = vadd.f32 %v1025_v44, %v929_v43 }
 0x43a   : > { %v1028_v52 = vadd.f32 %v1027_v45, %v929_v43 }
 0x43b   : > { %v1048_v60 = vmax.f32 %v1026_v47, 0.0 }
 0x43c   : > { %v1031_v53 = vpop.f32.mrb[10].mxu0  ;;  %v1049_v1 = vmax.f32 %v1028_v52, 0.0 }
 0x43d   : > { %v1032_v54 = vadd.f32 %v1031_v53, %v933_v46  ;;  %v1033_v55 = vpop.f32.mrb[11].mxu0  ;;  %v1183_v53 = vpop.permute.xlu1 %1182 }
 0x43e   : > { %v1034_v57 = vadd.f32 %v1033_v55, %v933_v46 }
 0x43f   : > { %v1050_v37 = vmax.f32 %v1032_v54, 0.0 }
 0x440   : > { %v1051_v3 = vmax.f32 %v1034_v57, 0.0  ;;  %v1037_v39 = vpop.f32.mrb[12].mxu0 }
 0x441   : > { %v1525_v4 = vpack.c.bf16 %v1050_v37, %v1048_v60  ;;  %v1039_v34 = vpop.f32.mrb[13].mxu0  ;;  %v1038_v40 = vadd.f32 %v1037_v39, %v937_v38  ;;  %v1206_v39 = vpop.permute.xlu0 %1205 }
 0x442   : > { %v1523_v5 = vpack.c.bf16 %v1051_v3, %v1049_v1  ;;  %v1040_v7 = vadd.f32 %v1039_v34, %v937_v38 }
 0x443   : > { %v1052_v21 = vmax.f32 %v1038_v40, 0.0 }
 0x444   : > { %v1043_v9 = vpop.f32.mrb[14].mxu0  ;;  %1524 = vmatprep.subr.bf16.mxu1 %v1523_v5  ;;  %v1053_v23 = vmax.f32 %v1040_v7, 0.0 }
 0x445   : > { %v1044_v12 = vadd.f32 %v1043_v9, %v941_v6  ;;  %v1045_v19 = vpop.f32.mrb[15].mxu0  ;;  %1526 = vmatpush1.bf16.msra.mxu1 %v1525_v4 }
 0x446   : > { %v1046_v20 = vadd.f32 %v1045_v19, %v941_v6 }
 0x447   : > { %v1054_v22 = vmax.f32 %v1044_v12, 0.0 }
 0x448   : > { %v1055_v24 = vmax.f32 %v1046_v20, 0.0 }
 0x449   : > { %v1529_v25 = vpack.c.bf16 %v1054_v22, %v1052_v21 }
 0x44a   : > { %v1527_v26 = vpack.c.bf16 %v1055_v24, %v1053_v23 }
 0x44c   : > { %1528 = vmatprep.subr.bf16.mxu1 %v1527_v26 }
 0x44d   : > { %1530 = vmatpush1.bf16.msra.mxu1 %v1529_v25 }
 0x450   : > { %1478 = vmatmul.mubr.msk.f32.vlgmr.msra.gmra.mrb[16].mxu1 %vm417_vm0, %v1057_v27 }
 0x451   : > { %1142 = vmatprep.mubr.f32.mxu1 %v1622_v16 }
 0x454   : > { %1479 = vmatmul.mubr.msk.f32.gmra.mrb[18].mxu1 %vm417_vm0, %v1059_v48 }
 0x455   : > { %1148 = vmatprep.mubr.f32.mxu1 %v1622_v16 }
 0x458   : > { %1480 = vmatmul.mubr.msk.f32.gmra.mrb[20].mxu1 %vm417_vm0, %v1061_v28 }
 0x459   : > { %1154 = vmatprep.mubr.f32.mxu1 %v1622_v16 }
 0x45c   : > { %1481 = vmatmul.mubr.msk.f32.gmra.mrb[22].mxu1 %vm417_vm0, %v1063_v49 }
 0x523   : > { %v1138_v56 = vpop.f32.mrb[16].mxu1 }
 0x524   : > { %v1161_v31 = vadd.f32 %v1138_v56, %v1919_v63  ;;  %v1140_v58 = vpop.f32.mrb[17].mxu1 }
 0x525   : > { %v1162_v61 = vadd.f32 %v1140_v58, %v1915_v51 }
 0x526   : > { %v1185_v2 = vadd.f32 %v1171_v59, %v1161_v31  ;;  %v1311_v31 = vshrl.u32 %v1310_v29, 7 }
 0x527   : > { %v1144_v62 = vpop.f32.mrb[18].mxu1  ;;  %v1186_v33 = vadd.f32 %v1171_v59, %v1162_v61 }
 0x528   : > { %v1163_v32 = vadd.f32 %v1144_v62, %v1913_v50  ;;  %v1146_v16 = vpop.f32.mrb[19].mxu1  ;;  %v1193_v17 = vmax.f32 %v1185_v2, 0.0  ;;  %v1312_v58 = vsub.s32 1, %v1311_v31  ;;  %v1322_v59 = vsub.s32 3, %v1311_v31 }
 0x529   : > { %v1164_v35 = vadd.f32 %v1146_v16, %v1917_v30  ;;  %v1194_v43 = vmax.f32 %v1186_v33, 0.0 }
 0x52a   : > { %v1187_v10 = vadd.f32 %v1175_v0, %v1163_v32 }
 0x52b   : > { %v1188_v14 = vadd.f32 %v1175_v0, %v1164_v35  ;;  %v1150_v13 = vpop.f32.mrb[20].mxu1 }
 0x52c   : > { %v1195_v18 = vmax.f32 %v1187_v10, 0.0  ;;  %v1165_v63 = vadd.f32 %v1150_v13, %v1939_v15  ;;  %v1152_v42 = vpop.f32.mrb[21].mxu1 }
 0x52d   : > { %v1196_v51 = vmax.f32 %v1188_v14, 0.0  ;;  %v1166_v44 = vadd.f32 %v1152_v42, %v1935_v41 }
 0x52e   : > { %v1533_v45 = vpack.c.bf16 %v1195_v18, %v1193_v17  ;;  %v1189_v47 = vadd.f32 %v1179_v11, %v1165_v63 }
 0x52f   : > { %v1156_v46 = vpop.f32.mrb[22].mxu1  ;;  %v1531_v50 = vpack.c.bf16 %v1196_v51, %v1194_v43  ;;  %v1190_v54 = vadd.f32 %v1179_v11, %v1166_v44 }
 0x530   : > { %v1167_v52 = vadd.f32 %v1156_v46, %v1933_v36  ;;  %v1158_v30 = vpop.f32.mrb[23].mxu1  ;;  %v1197_v60 = vmax.f32 %v1189_v47, 0.0  ;;  %v1201_v36 = vld [vmem:[%s2009_s6] sm:$0x1f] }
 0x531   : > { %v1168_v55 = vadd.f32 %v1158_v30, %v1937_v8  ;;  %1532 = vmatprep.subr.bf16.mxu0 %v1531_v50  ;;  %v1198_v1 = vmax.f32 %v1190_v54, 0.0 }
 0x532   : > { %v1191_v57 = vadd.f32 %v1183_v53, %v1167_v52  ;;  %1534 = vmatpush1.bf16.msra.mxu0 %v1533_v45 }
 0x533   : > { %v1192_v15 = vadd.f32 %v1183_v53, %v1168_v55 }
 0x534   : > { %v1199_v37 = vmax.f32 %v1191_v57, 0.0 }
 0x535   : > { %v1200_v38 = vmax.f32 %v1192_v15, 0.0 }
 0x536   : > { %v1537_v41 = vpack.c.bf16 %v1199_v37, %v1197_v60 }
 0x537   : > { %v1535_v3 = vpack.c.bf16 %v1200_v38, %v1198_v1 }
 0x539   : > { %1536 = vmatprep.subr.bf16.mxu0 %v1535_v3 }
 0x53a   : > { %1538 = vmatpush1.bf16.msra.mxu0 %v1537_v41 }
 0x53d   : > { %1482 = vmatmul.mubr.msk.f32.vlgmr.msra.gmra.mrb[16].mxu0 %vm417_vm0, %v1201_v36 }
 0x610   : > { %v1277_v8 = vpop.f32.mrb[16].mxu0 }
 0x611   : > { %v1278_v4 = vadd.f32 %v1277_v8, %v1206_v39  ;;  %v1279_v34 = vpop.f32.mrb[17].mxu0 }
 0x612   : > { %v1280_v5 = vadd.f32 %v1279_v34, %v1206_v39 }
 0x613   : > { %v1282_v40 = vmul.f32 %v1278_v4, %v1278_v4 }
 0x614   : > { %v1283_v6 = vmul.f32 %v1280_v5, %v1280_v5 }
 0x615   : > { %v1286_v7 = vrot.slane %v1282_v40, 1 }
 0x616   : > { %v1287_v9 = vrot.slane %v1283_v6, 1 }
 0x617   : > { %v1290_v12 = vadd.f32 %v1286_v7, %v1282_v40 }
 0x618   : > { %v1291_v19 = vadd.f32 %v1287_v9, %v1283_v6 }
 0x619   : > { %1589 = vrsqrt.f32 %v1290_v12  ;;  %vm1294_vm2 = vcmp.eq.f32.partialorder %v1290_v12, inf  ;;  %v1297_v23 = vand.u32 2147483648, %v1290_v12  ;;  %vm1296_vm3 = vcmp.eq.f32.partialorder %v1290_v12, 0.0 }
 0x61a   : > { %1591 = vrsqrt.f32 %v1291_v19  ;;  %vm1301_vm4 = vcmp.eq.f32.partialorder %v1291_v19, inf  ;;  %v1304_v26 = vand.u32 2147483648, %v1291_v19  ;;  %vm1303_vm5 = vcmp.eq.f32.partialorder %v1291_v19, 0.0 }
 0x623   : > { %v1590_v20 = vpop.eup %1589 }
 0x624   : > { %v1592_v21 = vpop.eup %1591  ;;  %v1293_v22 = vmul.f32 %v1590_v20, %v1290_v12 }
 0x625   : > { %v1300_v24 = vmul.f32 %v1592_v21, %v1291_v19 }
 0x626   : > { %v1295_v25 = vsel %vm1294_vm2, %v1290_v12, %v1293_v22 }
 0x627   : > { %v1298_v27 = vsel %vm1296_vm3, %v1297_v23, %v1295_v25  ;;  %v1302_v48 = vsel %vm1301_vm4, %v1291_v19, %v1300_v24 }
 0x628   : > { %v1306_v28 = vadd.f32 1e-08, %v1298_v27  ;;  %v1305_v49 = vsel %vm1303_vm5, %v1304_v26, %v1302_v48  ;;  %v1332_v10 = vrot.slane %v1298_v27, 6  ;;  %v1342_v63 = vrot.slane %v1298_v27, 5 }
 0x629   : > { %v1307_v56 = vadd.f32 1e-08, %v1305_v49  ;;  %v1333_v18 = vrot.slane %v1305_v49, 6  ;;  %v1343_v45 = vrot.slane %v1305_v49, 5 }
 0x62a   : > { %1593 = vrcp.f32 %v1306_v28 }
 0x62b   : > { %1595 = vrcp.f32 %v1307_v56 }
 0x634   : > { %v1594_v61 = vpop.eup %1593 }
 0x635   : > { %v1596_v62 = vpop.eup %1595  ;;  %v1313_v0 = vrot.slane %v1594_v61, %v1312_v58  ;;  %v1323_v2 = vrot.slane %v1594_v61, %v1322_v59 }
 0x636   : > { %v1317_v32 = vrot.slane %v1596_v62, %v1312_v58  ;;  %v1327_v16 = vrot.slane %v1596_v62, %v1322_v59 }
 0x637   : > { %v1318_v33 = vmul.f32 %v1313_v0, %v1278_v4  ;;  %v1328_v35 = vmul.f32 %v1323_v2, %v1278_v4 }
 0x638   : > { %v1319_v11 = vmul.f32 %v1317_v32, %v1280_v5  ;;  %v1329_v14 = vmul.f32 %v1327_v16, %v1280_v5 }
 0x639   : > { %v1338_v13 = vrot.slane %v1328_v35, 7  ;;  %v1347_v17 = vsel %vm1346_vm6, %v1278_v4, %v1318_v33 }
 0x63a   : > { %v1350_v42 = vsel %vm1349_vm7, %v1347_v17, %v1332_v10  ;;  %v1339_v43 = vrot.slane %v1329_v14, 7  ;;  %v1348_v51 = vsel %vm1346_vm6, %v1280_v5, %v1319_v11 }
 0x63b   : > { %v1353_v44 = vsel %vm1352_vm8, %v1350_v42, %v1338_v13  ;;  %v1351_v46 = vsel %vm1349_vm7, %v1348_v51, %v1333_v18 }
 0x63c   : > { %v1356_v50 = vsel %vm1355_vm9, %v1353_v44, %v1342_v63  ;;  %v1354_v47 = vsel %vm1352_vm8, %v1351_v46, %v1339_v43 }
 0x63d   : > { %v1359_v52 = vsel %vm1358_vm10, %v1356_v50, 0.0  ;;  %v1357_v30 = vsel %vm1355_vm9, %v1354_v47, %v1343_v45 }
 0x63e   : > { %1361 = vst [vmem:[%s387_s24] sm:$0xff] %v1359_v52  ;;  %v1360_v53 = vsel %vm1358_vm10, %v1357_v30, 0.0 }
 0x63f   : > { %1362 = vst [vmem:[%s387_s24 + $0x8] sm:$0xff] %v1360_v53 }
 0x640 PF: > { %p15_p9 = scmp.ge.s32.totalorder %s1692_s9, 4   ;;  %s2013_s27 = smov %s1615_s28 }
 0x641   : > { %s2014_s28 = smov %s1701_s12  ;;  %s2015_s29 = smov %s1692_s9 }
 0x642   :  { %17 = sbr.rel (!%p15_p9) target bundleno = 2 (0x2), region = 141 }

</bundles_post_ra>
